<compile_context>
chip_gen: v6e
topology: v6e:2x2x1
jax: 0.10.0
libtpu: 0.0.40
codegen_flags: <defaults>
</compile_context>

<pallas_src>
import math

import jax
import jax.numpy as jnp
from jax import lax
from jax.experimental import pallas as pl
from jax.experimental.pallas import tpu as pltpu


def _sublane(itemsize: int) -> int:
    # Second-minor granularity: 8 rows for 4-byte dtypes, 16 for bf16, 32 for int8.
    return max(8, 32 // max(itemsize, 1))


def _linear_kernel(x_ref, w_ref, b_ref, o_ref):
    # x_ref: (tm, in_dim); w_ref: (tn, in_dim); b_ref: (1, tn); o_ref: (tm, tn)
    # Contract x's dim 1 with w's dim 1 (i.e. x @ W.T) -- no wrapper transpose.
    acc = lax.dot_general(
        x_ref[...], w_ref[...],
        dimension_numbers=(((1,), (1,)), ((), ())),
        preferred_element_type=jnp.float32)
    o_ref[...] = (acc + b_ref[...].astype(jnp.float32)).astype(o_ref.dtype)


def _choose_tiles(m, in_dim, out_dim, itemsize):
    """Pick (tm, tn): biggest M tile that keeps double-buffered x/out + W tile in budget."""
    sub = _sublane(itemsize)
    # N tile: keep the full out_dim resident when it comfortably fits; otherwise
    # stream lane-dense 512-wide weight/output tiles.
    tn = out_dim if out_dim <= 2048 else 512

    budget = 32 * 1024 * 1024                               # safe on v5e/v6e/v7x
    resident = 2 * (tn * in_dim + tn) * itemsize            # W tile + bias (2x worst case)
    per_row = 2 * (in_dim + tn) * itemsize                  # double-buffered x & out rows
    avail = max(budget - resident, per_row * sub)
    tm = max(sub, min(avail // per_row, 1024))
    tm = (tm // sub) * sub
    m_pad = ((m + sub - 1) // sub) * sub
    tm = int(max(sub, min(tm, m_pad)))
    return tm, int(tn)


def linear_norm_forward(x, weight, bias, *, block_rows=None, block_cols=None,
                        use_pallas=None):
    """AutoVC LinearNorm forward: y = x @ W.T + b.

    x: (..., in_dim); weight: (out_dim, in_dim); bias: (out_dim,).
    """
    out_dim, in_dim = weight.shape
    orig_shape = x.shape
    x2d = x.reshape(-1, in_dim)
    m = x2d.shape[0]
    itemsize = jnp.dtype(x.dtype).itemsize

    if use_pallas is None:
        # Tiny problems: fixed pallas_call launch overhead dominates; let XLA fuse.
        use_pallas = (m * in_dim * out_dim) >= (1 << 18)
    if not use_pallas:
        out = x2d @ weight.T + bias
        return out.reshape(*orig_shape[:-1], out_dim)

    tm_auto, tn_auto = _choose_tiles(m, in_dim, out_dim, itemsize)
    tm = block_rows if block_rows is not None else tm_auto
    tn = block_cols if block_cols is not None else tn_auto
    grid_m = pl.cdiv(m, tm)
    grid_n = pl.cdiv(out_dim, tn)

    cost = pl.CostEstimate(
        flops=2 * m * in_dim * out_dim,
        transcendentals=0,
        bytes_accessed=itemsize * (m * in_dim + in_dim * out_dim + out_dim
                                   + m * out_dim))

    # Actual VMEM use (double buffers on everything, worst case) + headroom,
    # clamped well under v7x's 64 MiB physical VMEM.
    vmem_need = 2 * itemsize * (tm * in_dim + tm * tn + tn * in_dim + tn)
    vmem_limit = int(min(48 * 1024 * 1024,
                         max(2 * vmem_need, 16 * 1024 * 1024)))

    b2d = bias.reshape(1, out_dim)

    out = pl.pallas_call(
        _linear_kernel,
        out_shape=jax.ShapeDtypeStruct((m, out_dim), x.dtype),
        grid_spec=pltpu.PrefetchScalarGridSpec(
            num_scalar_prefetch=0,
            grid=(grid_m, grid_n),
            in_specs=[
                pl.BlockSpec((tm, in_dim), lambda i, j: (i, 0)),   # streamed activations
                pl.BlockSpec((tn, in_dim), lambda i, j: (j, 0)),   # weight tile (resident if grid_n==1)
                pl.BlockSpec((1, tn), lambda i, j: (0, j)),        # bias tile
            ],
            out_specs=pl.BlockSpec((tm, tn), lambda i, j: (i, j)),
        ),
        compiler_params=pltpu.CompilerParams(
            dimension_semantics=("parallel", "parallel"),  # shard across TCs on v7x
            vmem_limit_bytes=vmem_limit),
        cost_estimate=cost,
    )(x2d, weight, b2d)

    return out.reshape(*orig_shape[:-1], out_dim)


def init_linear_norm_params(key, in_dim, out_dim, w_init_gain="linear"):
    """Deterministic parameter init matching LinearNorm.__init__."""
    kw, kb = jax.random.split(key)
    gain = 1.0  # torch.nn.init.calculate_gain('linear') == 1.0
    bound_w = gain * math.sqrt(6.0 / (in_dim + out_dim))        # xavier_uniform_
    weight = jax.random.uniform(
        kw, (out_dim, in_dim), jnp.float32, minval=-bound_w, maxval=bound_w)
    bound_b = 1.0 / math.sqrt(in_dim)                           # nn.Linear default bias
    bias = jax.random.uniform(
        kb, (out_dim,), jnp.float32, minval=-bound_b, maxval=bound_b)
    return weight, bias


if __name__ == "__main__":
    key = jax.random.PRNGKey(0)
    k_x1, k_x2, k_p1, k_p2 = jax.random.split(key, 4)

    # Case 1: tiny AutoVC-like shapes (single tile, forced through the kernel).
    batch, seq, in_dim, out_dim = 2, 8, 32, 32
    x1 = jax.random.normal(k_x1, (batch, seq, in_dim), dtype=jnp.float32)
    w1, b1 = init_linear_norm_params(k_p1, in_dim, out_dim)
    y1 = jax.block_until_ready(linear_norm_forward(x1, w1, b1, use_pallas=True))
    r1 = x1 @ w1.T + b1
    assert y1.shape == (batch, seq, out_dim)
    assert jnp.allclose(y1, r1, atol=1e-5, rtol=1e-5)

    # Case 2: larger M with lane-dense features and a non-divisible last M tile
    # (M = 400, tm = 128 -> grid of 4, final block partially OOB) to exercise
    # the pipelined / resident-weight path.
    batch, seq, in_dim, out_dim = 2, 200, 128, 128
    x2 = jax.random.normal(k_x2, (batch, seq, in_dim), dtype=jnp.float32)
    w2, b2 = init_linear_norm_params(k_p2, in_dim, out_dim)
    y2 = jax.block_until_ready(
        linear_norm_forward(x2, w2, b2, block_rows=128, use_pallas=True))
    r2 = x2 @ w2.T + b2
    assert y2.shape == (batch, seq, out_dim)
    assert jnp.allclose(y2, r2, atol=1e-4, rtol=1e-4)

    print("KERNEL_OK")
</pallas_src>

<mosaic_0001>
module attributes {stable_mosaic.version = 11 : i64} {
  func.func @_linear_kernel(%arg0: i32, %arg1: i32, %arg2: memref<16x32xf32, #tpu.memory_space<vmem>>, %arg3: memref<32x32xf32, #tpu.memory_space<vmem>>, %arg4: memref<1x32xf32, #tpu.memory_space<vmem>>, %arg5: memref<16x32xf32, #tpu.memory_space<vmem>>) attributes {dimension_semantics = [#tpu.dimension_semantics<parallel>, #tpu.dimension_semantics<parallel>], iteration_bounds = array<i64: 1, 1>, scalar_prefetch = 0 : i64, scratch_operands = 0 : i64, tpu.core_type = #tpu.core_type<tc>, window_params = [{transform_indices = @transform_0, window_bounds = array<i64: 16, 32>}, {transform_indices = @transform_1, window_bounds = array<i64: 32, 32>}, {transform_indices = @transform_2, window_bounds = array<i64: 1, 32>}, {transform_indices = @transform_3, window_bounds = array<i64: 16, 32>}]} {
    %c0 = arith.constant 0 : index
    %c0_0 = arith.constant 0 : index
    %0 = vector.load %arg2[%c0, %c0_0] : memref<16x32xf32, #tpu.memory_space<vmem>>, vector<16x32xf32>
    %c0_1 = arith.constant 0 : index
    %c0_2 = arith.constant 0 : index
    %1 = vector.load %arg3[%c0_1, %c0_2] : memref<32x32xf32, #tpu.memory_space<vmem>>, vector<32x32xf32>
    %cst = arith.constant dense<0.000000e+00> : vector<16x32xf32>
    %2 = tpu.matmul %0, %1, %cst {dimension_numbers = #tpu.dot_dimension_numbers<[1], [1], [0], [0], [0, 0, 1, 0], [], []>} : vector<16x32xf32>, vector<32x32xf32>, vector<16x32xf32> -> vector<16x32xf32>
    %c0_3 = arith.constant 0 : index
    %c0_4 = arith.constant 0 : index
    %3 = vector.load %arg4[%c0_3, %c0_4] : memref<1x32xf32, #tpu.memory_space<vmem>>, vector<1x32xf32>
    %4 = vector.broadcast %3 : vector<1x32xf32> to vector<16x32xf32>
    %5 = arith.addf %2, %4 : vector<16x32xf32>
    %c0_5 = arith.constant 0 : index
    %c0_6 = arith.constant 0 : index
    %6 = vector.load %arg5[%c0_5, %c0_6] : memref<16x32xf32, #tpu.memory_space<vmem>>, vector<16x32xf32>
    tpu.vector_store %arg5[%c0_5, %c0_6], %5 {strides = array<i32>} : memref<16x32xf32, #tpu.memory_space<vmem>>, vector<16x32xf32>,
    return
  }
  func.func @transform_0(%arg0: i32, %arg1: i32) -> (i32, i32) {
    %c0_i32 = arith.constant 0 : i32
    %c0_i32_0 = arith.constant 0 : i32
    return %arg0, %c0_i32 : i32, i32
  }
  func.func @transform_1(%arg0: i32, %arg1: i32) -> (i32, i32) {
    %c0_i32 = arith.constant 0 : i32
    %c0_i32_0 = arith.constant 0 : i32
    return %arg1, %c0_i32 : i32, i32
  }
  func.func @transform_2(%arg0: i32, %arg1: i32) -> (i32, i32) {
    %c0_i32 = arith.constant 0 : i32
    %c0_i32_0 = arith.constant 0 : i32
    return %c0_i32, %arg1 : i32, i32
  }
  func.func @transform_3(%arg0: i32, %arg1: i32) -> (i32, i32) {
    %c0_i32 = arith.constant 0 : i32
    return %arg0, %arg1 : i32, i32
  }
}

</mosaic_0001>

<bundles_post_ra>
// kernel: tpu_custom_call.1
= control target key start
LH: loop header
LB: loop body
LE: loop exit
PB: predicated region body
PF: predicated region fallthrough
CT: control target
= control target key end

     0   :  { %8 = vsyncpa [#allocation3], 0  ;;  %s323_s0 = inlined_call_operand.hbm [shape: f32[16,32], index: 0, kind: input, shape index: {}]   ;;  %s324_s1 = inlined_call_operand.hbm [shape: f32[32,32], index: 1, kind: input, shape index: {}]   ;;  %s325_s2 = inlined_call_operand.vmem [shape: f32[1,32], index: 2, kind: input, shape index: {}]   ;;  %s326_s3 = inlined_call_operand.hbm [shape: f32[16,32], index: 3, kind: output, shape index: {}]  }
   0x1   :  { %9 = vsyncpa [#allocation6], 0 }
   0x2   :  { %10 = vsyncpa [#allocation4], 0  ;;  %s265_s12 = smov [#allocation2]  }
   0x3   :  { %s16_s13 = sshll.u32 %s265_s12, 4  ;;  %s17_s13 = int_to_ptr.vmem [resolvable:$true] %s16_s13 }
   0x4   :  { %s207_s14 = scalar_lea.vmem %s17_s13, 256  ;;  %p212_p1 = scmp.lt.s32.totalorder %s17_s13, %s17_s13 }
   0x5   :  { %p208_p0 = scmp.ne.s32.totalorder %s17_s13, %s207_s14  ;;  %p213_p2 = scmp.lt.s32.totalorder %s207_s14, %s207_s14 }
   0x7   :  { %p214_p3 = por %p213_p2, %p212_p1 }
   0x9   :  { %p215_p4 = pnand %p214_p3, %p208_p0 }
   0xb   :  { %218 = shalt.err (!%p215_p4)
}
   0xc   :  { %s266_s15 = smov 128   ;;  %s267_s16 = smov 8  }
   0xd   :  { %22 = dma.hbm_to_vmem [thread:$0]  %s323_s0, 256, %s17_s13, [#allocation3], %s266_s15, %s266_s15, %s267_s16  }
   0xe   :  { %s268_s19 = smov [#allocation5]  }
   0xf   :  { %s28_s20 = sshll.u32 %s268_s19, 4  ;;  %s29_s20 = int_to_ptr.vmem [resolvable:$true] %s28_s20 }
  0x10   :  { %s227_s21 = scalar_lea.vmem %s29_s20, 512  ;;  %p232_p6 = scmp.lt.s32.totalorder %s29_s20, %s29_s20 }
  0x11   :  { %p228_p5 = scmp.ne.s32.totalorder %s29_s20, %s227_s21  ;;  %p233_p7 = scmp.lt.s32.totalorder %s227_s21, %s227_s21 }
  0x13   :  { %p234_p8 = por %p233_p7, %p232_p6 }
  0x15   :  { %p235_p9 = pnand %p234_p8, %p228_p5 }
  0x17   :  { %238 = shalt.err (!%p235_p9)
}
  0x18   :  { %34 = dma.hbm_to_vmem [thread:$0]  %s324_s1, 512, %s29_s20, [#allocation6], %s266_s15, %s266_s15, %s267_s16  }
  0x19   :  { %259 = dma.done.wait [#allocation3], 256  }
  0x1a   :  { %260 = vsyncadd [#allocation3], 4294967040 }
  0x1b   :  { %261 = dma.done.wait [#allocation6], 512  }
  0x1c   :  { %262 = vsyncadd [#allocation6], 4294966784  ;;  %vm56_vm0 = vcmask 261120   ;;  %v48_v0 = vld [vmem:[#allocation5 + $0x18] sm:$0xff]  ;;  %v47_v1 = vld [vmem:[#allocation5 + $0x10] sm:$0xff]  ;;  %s269_s24 = smov [#allocation7]  }
  0x1d   :  { %183 = vmatprep.subr.msk.mxu0 %vm56_vm0, %v48_v0  ;;  %v43_v2 = vld [vmem:[#allocation2] sm:$0xff]  ;;  %v46_v3 = vld [vmem:[#allocation5 + $0x8] sm:$0xff]  ;;  %v45_v4 = vld [vmem:[#allocation5] sm:$0xff]  ;;  %s157_s25 = sshll.u32 %s269_s24, 4  ;;  %s158_s25 = int_to_ptr.vmem [resolvable:$true] %s157_s25 }
  0x1e   :  { %184 = vmatpush3.xpose.msk.msra.mxu0 %vm56_vm0, %v48_v0  ;;  %191 = vmatprep.mubr.msk.f32.mxu0 %vm56_vm0, %v43_v2  ;;  %v44_v5 = vld [vmem:[#allocation2 + $0x8] sm:$0xff]  ;;  %v170_v6 = vld [vmem:[%s325_s2] ss:$0 sm:$0xff]  ;;  %s239_s26 = scalar_lea.vmem %s158_s25, 256  ;;  %p244_p11 = scmp.lt.s32.totalorder %s158_s25, %s158_s25 }
  0x1f   :  { %185 = vmatprep.subr.msk.mxu0 %vm56_vm0, %v47_v1  ;;  %p240_p10 = scmp.ne.s32.totalorder %s158_s25, %s239_s26  ;;  %p245_p12 = scmp.lt.s32.totalorder %s239_s26, %s239_s26 }
  0x21   :  { %p246_p13 = por %p245_p12, %p244_p11 }
  0x22   :  { %186 = vmatpush3.xpose.msk.msra.mxu0 %vm56_vm0, %v47_v1 }
  0x23   :  { %187 = vmatprep.subr.msk.mxu0 %vm56_vm0, %v46_v3  ;;  %p247_p0 = pnand %p246_p13, %p240_p10 }
  0x26   :  { %188 = vmatpush3.xpose.msk.msra.mxu0 %vm56_vm0, %v46_v3 }
  0x27   :  { %189 = vmatprep.subr.msk.mxu0 %vm56_vm0, %v45_v4 }
  0x2a   :  { %190 = vmatpush3.xpose.msk.msra.mxu0 %vm56_vm0, %v45_v4 }
  0x2d   :  { %192 = vmatmul.mubr.msk.f32.vlgmr.msra.gmra.mxu0 %vm56_vm0, %v44_v5 }
  0xed   :  { %v193_v7 = vpop.f32.mrf.mxu0 }
  0xee   :  { %v147_v8 = vadd.f32 %v193_v7, %v170_v6 }
  0xef   :  { %v141_v9 = vpop.f32.mrf.mxu0 }
  0xf0   :  { %151 = vst.msk [vmem:[#allocation7 + $0x8] sm:$0xff] %vm56_vm0, %v147_v8  ;;  %v142_v10 = vadd.f32 %v170_v6, %v141_v9 }
  0xf2   :  { %150 = vst.msk [vmem:[#allocation7] sm:$0xff] %vm56_vm0, %v142_v10 }
  0xf3   :  { %250 = shalt.err (!%p247_p0)
}
  0xf4   :  { %163 = dma.vmem_to_hbm [thread:$0]  %s158_s25, 256, %s326_s3, [#allocation4], %s266_s15, %s266_s15, %s267_s16  }
  0xf5   :  { %263 = dma.done.wait [#allocation4], 256  }
  0xf6   :  { %264 = vsyncadd [#allocation4], 4294967040 }
  0xf7   :  { %167 = vsyncpa [#allocation3], 1 }
  0xf8   :  { %168 = vsyncpa [#allocation6], 1 }
  0xf9   :  { %169 = vsyncpa [#allocation4], 1 }

</bundles_post_ra>
